<compile_context>
chip_gen: v7x
topology: tpu7x:2x2x1
jax: 0.10.0
libtpu: 0.0.40
codegen_flags: <defaults>
</compile_context>

<pallas_src>
import jax
import jax.numpy as jnp
from jax.experimental import pallas as pl
from jax.experimental.pallas import tpu as pltpu


def _round_up(x, m):
    return -(-x // m) * m


def _choose_nb(n):
    """Images per grid step. Keep the parallel grid extent >= 2 when possible
    (v7x has 2 TensorCores); otherwise fall back to 1 image per step."""
    for nb in (8, 4, 2):
        if n % nb == 0 and n // nb >= 2:
            return nb
    return 1


def _choose_tile_m(m_img, nb, c_pad, acc_budget_bytes=64 * 1024):
    """Largest pixel tile (multiple of 8, divisor of H*W) whose f32 conv-output
    tile (nb*tile_m, c_pad) stays within a ~64 KB register/VMEM budget, so the
    kernel never flips into a spill-bound regime (v5e has a single vst slot)."""
    max_m = max(8, acc_budget_bytes // (c_pad * 4))
    tile_m = 8
    for t in range(8, m_img + 1, 8):
        if m_img % t == 0 and nb * t <= max_m:
            tile_m = t
    return tile_m


def model_wrapper_forward(x, params, *, nb=None, tile_m=None,
                          compute_dtype=jnp.bfloat16):
    """Forward pass of ModelWrapperBase (synthetic concrete subclass).

    x: (N, C_in, H, W) float32, NCHW (PyTorch layout).
    returns: (N, num_classes) float32.
    """
    N, C_in, H, W = x.shape
    conv_w = params["conv_w"]          # (C_feat, C_in, 3, 3)  PyTorch OIHW
    conv_b = params["conv_b"]          # (C_feat,)
    fc_w = params["fc_w"]              # (num_classes, C_feat) PyTorch layout
    fc_b = params["fc_b"]              # (num_classes,)
    C_feat = conv_w.shape[0]
    num_classes = fc_w.shape[0]

    K9 = 9 * C_in
    k_pad = _round_up(K9, 128)            # lane-dense contraction dim
    c_pad = _round_up(C_feat, 128)        # MXU output width (128: matches v5e MXU)
    nc_pad = _round_up(num_classes, 128)  # lane-dense logits store

    M_img = H * W
    if nb is None:
        nb = _choose_nb(N)
    assert N % nb == 0, "nb must divide N"
    if tile_m is None:
        tile_m = _choose_tile_m(M_img, nb, c_pad)
    assert M_img % tile_m == 0 and tile_m % 8 == 0, "tile_m must divide H*W (mult of 8)"
    n_m = M_img // tile_m

    # ---- host-side glue (cheap XLA): lane-dense im2col + weight packing -----
    # NCHW -> NHWC, SAME pad, gather the 9 shifted 3x3 windows ONCE so the
    # kernel sees a single dense (M, K) matmul operand: one fused MXU matmul
    # per step, no per-tap slices, no in-kernel relayouts, and each
    # (tile_m, k_pad) block DMA is one contiguous burst.
    x_nhwc = jnp.transpose(x, (0, 2, 3, 1))                        # (N,H,W,C)
    x_p = jnp.pad(x_nhwc, ((0, 0), (1, 1), (1, 1), (0, 0)))        # (N,Hp,Wp,C)
    taps = [x_p[:, kh:kh + H, kw:kw + W, :] for kh in range(3) for kw in range(3)]
    patches = jnp.stack(taps, axis=3).reshape(N, M_img, K9)        # K = (kh,kw,ci)
    patches = jnp.pad(patches, ((0, 0), (0, 0), (0, k_pad - K9)))
    patches = patches.astype(compute_dtype)                        # (N, H*W, k_pad)

    # conv weights with the same tap-major K ordering, bf16 MXU operands
    w_k = jnp.transpose(conv_w, (2, 3, 1, 0)).reshape(K9, C_feat)  # (kh,kw,ci) x co
    w_k = jnp.pad(w_k, ((0, k_pad - K9), (0, c_pad - C_feat))).astype(compute_dtype)
    cb = jnp.pad(conv_b, (0, c_pad - C_feat)).reshape(1, c_pad).astype(jnp.float32)
    fw = jnp.pad(fc_w.T.astype(jnp.float32),
                 ((0, c_pad - C_feat), (0, nc_pad - num_classes)))
    fb = jnp.pad(fc_b.astype(jnp.float32),
                 (0, nc_pad - num_classes)).reshape(1, nc_pad)

    inv_hw = float(1.0 / M_img)

    def kernel(p_ref, cw_ref, cb_ref, fw_ref, fb_ref, o_ref, pool_ref):
        # grid = (image-block n [parallel], pixel-tile m [arbitrary/reduction])
        m = pl.program_id(1)

        @pl.when(m == 0)
        def _init():
            pool_ref[...] = jnp.zeros_like(pool_ref)

        # ONE fused im2col matmul: all 9 taps and all input channels contracted
        # in a single MXU push sequence; bf16 operands, f32 accumulation.
        a = p_ref[...].reshape(nb * tile_m, k_pad)        # layout-preserving
        feat = jnp.dot(a, cw_ref[...], preferred_element_type=jnp.float32)
        feat = jnp.maximum(feat + cb_ref[...], 0.0)       # bias + ReLU (f32)
        # fused AdaptiveAvgPool2d(1): per-image partial spatial sums
        pool_ref[...] += jnp.sum(feat.reshape(nb, tile_m, c_pad), axis=1)

        @pl.when(m == pl.num_programs(1) - 1)
        def _finalize():
            pooled = pool_ref[...] * inv_hw               # (nb, c_pad) == flatten
            logits = jnp.dot(pooled, fw_ref[...],
                             preferred_element_type=jnp.float32) + fb_ref[...]
            o_ref[...] = logits.reshape(nb, 1, nc_pad).astype(o_ref.dtype)

    itemsize = jnp.dtype(compute_dtype).itemsize
    cost = pl.CostEstimate(
        flops=2 * N * M_img * K9 * C_feat + 2 * N * C_feat * num_classes,
        transcendentals=0,
        bytes_accessed=(N * M_img * k_pad * itemsize           # patches, read once
                        + k_pad * c_pad * itemsize             # conv weights
                        + (c_pad + c_pad * nc_pad + nc_pad) * 4  # biases + fc
                        + N * nc_pad * 4),                     # logits out
    )

    out_padded = pl.pallas_call(
        kernel,
        out_shape=jax.ShapeDtypeStruct((N, 1, nc_pad), jnp.float32),
        grid=(N // nb, n_m),
        in_specs=[
            pl.BlockSpec((nb, tile_m, k_pad), lambda n, m: (n, m, 0)),   # patches
            pl.BlockSpec((k_pad, c_pad), lambda n, m: (0, 0)),           # conv w
            pl.BlockSpec((1, c_pad), lambda n, m: (0, 0)),               # conv b
            pl.BlockSpec((c_pad, nc_pad), lambda n, m: (0, 0)),          # fc w
            pl.BlockSpec((1, nc_pad), lambda n, m: (0, 0)),              # fc b
        ],
        out_specs=pl.BlockSpec((nb, 1, nc_pad), lambda n, m: (n, 0, 0)),
        scratch_shapes=[pltpu.VMEM((nb, c_pad), jnp.float32)],  # pooled-sum acc
        compiler_params=pltpu.CompilerParams(
            dimension_semantics=("parallel", "arbitrary"),
            vmem_limit_bytes=32 * 1024 * 1024,
        ),
        cost_estimate=cost,
    )(patches, w_k, cb, fw, fb)

    # TODO(synk): dropout (nn.Dropout) omitted -- dropout_p=None in this config.
    return out_padded[:, 0, :num_classes]


def init_params(key, c_in=4, c_feat=32, num_classes=10):
    k1, k2, k3, k4 = jax.random.split(key, 4)
    conv_scale = 1.0 / jnp.sqrt(c_in * 9.0)
    fc_scale = 1.0 / jnp.sqrt(float(c_feat))
    return {
        "conv_w": jax.random.uniform(k1, (c_feat, c_in, 3, 3), jnp.float32,
                                     -conv_scale, conv_scale),
        "conv_b": jax.random.uniform(k2, (c_feat,), jnp.float32,
                                     -conv_scale, conv_scale),
        "fc_w": jax.random.uniform(k3, (num_classes, c_feat), jnp.float32,
                                   -fc_scale, fc_scale),
        "fc_b": jax.random.uniform(k4, (num_classes,), jnp.float32,
                                   -fc_scale, fc_scale),
    }


def _reference_forward(x, params):
    # pure-JAX f32 reference for sanity check
    feat = jax.lax.conv_general_dilated(
        x, params["conv_w"], window_strides=(1, 1), padding="SAME",
        dimension_numbers=("NCHW", "OIHW", "NCHW"))
    feat = jnp.maximum(feat + params["conv_b"][None, :, None, None], 0.0)
    pooled = feat.mean(axis=(2, 3))                      # (N, C_feat)
    return pooled @ params["fc_w"].T + params["fc_b"]


if __name__ == "__main__":
    key = jax.random.PRNGKey(0)
    kx, kp = jax.random.split(key)

    N, C_in, H, W = 2, 4, 16, 16          # NCHW, matching PyTorch image inputs
    C_feat, num_classes = 32, 10

    x = jax.random.normal(kx, (N, C_in, H, W), jnp.float32)
    params = init_params(kp, c_in=C_in, c_feat=C_feat, num_classes=num_classes)

    fwd = jax.jit(model_wrapper_forward, static_argnames=("nb", "tile_m"))
    # defaults -> nb=1 (parallel extent 2), tile_m=128 -> 2 reduction steps per
    # image, exercising the fused-pool init/accumulate/finalize path.
    out = fwd(x, params)
    out = jax.block_until_ready(out)

    ref = _reference_forward(x, params)
    assert out.shape == (N, num_classes)
    # bf16 matmul operands (f32 accumulation) -> widened tolerance vs f32 ref.
    assert jnp.allclose(out, ref, atol=3e-2, rtol=3e-2), (
        "mismatch vs reference, max abs err = "
        f"{float(jnp.max(jnp.abs(out - ref)))}")

    print("KERNEL_OK")
</pallas_src>

<mosaic_0001>
module attributes {stable_mosaic.version = 11 : i64} {
  func.func @kernel(%arg0: i32, %arg1: i32, %arg2: memref<1x128x128xbf16, #tpu.memory_space<vmem>>, %arg3: memref<128x128xbf16, #tpu.memory_space<vmem>>, %arg4: memref<1x128xf32, #tpu.memory_space<vmem>>, %arg5: memref<128x128xf32, #tpu.memory_space<vmem>>, %arg6: memref<1x128xf32, #tpu.memory_space<vmem>>, %arg7: memref<1x1x128xf32, #tpu.memory_space<vmem>>, %arg8: memref<1x128xf32, #tpu.memory_space<vmem>>) attributes {dimension_semantics = [#tpu.dimension_semantics<parallel>, #tpu.dimension_semantics<arbitrary>], iteration_bounds = array<i64: 2, 2>, scalar_prefetch = 0 : i64, scratch_operands = 1 : i64, tpu.core_type = #tpu.core_type<tc>, window_params = [{transform_indices = @transform_0, window_bounds = array<i64: 1, 128, 128>}, {pipeline_mode = #tpu.pipeline_mode<synchronous>, transform_indices = @transform_1, window_bounds = array<i64: 128, 128>}, {pipeline_mode = #tpu.pipeline_mode<synchronous>, transform_indices = @transform_2, window_bounds = array<i64: 1, 128>}, {pipeline_mode = #tpu.pipeline_mode<synchronous>, transform_indices = @transform_3, window_bounds = array<i64: 128, 128>}, {pipeline_mode = #tpu.pipeline_mode<synchronous>, transform_indices = @transform_4, window_bounds = array<i64: 1, 128>}, {transform_indices = @transform_5, window_bounds = array<i64: 1, 1, 128>}]} {
    %c0_i32 = arith.constant 0 : i32
    %0 = arith.cmpi eq, %arg1, %c0_i32 : i32
    %1 = arith.extui %0 : i1 to i32
    %c0_i32_0 = arith.constant 0 : i32
    %2 = arith.cmpi ne, %1, %c0_i32_0 : i32
    scf.if %2 {
      %cst_14 = arith.constant 0.000000e+00 : f32
      %20 = vector.broadcast %cst_14 : f32 to vector<1x128xf32>
      %c0_15 = arith.constant 0 : index
      %c0_16 = arith.constant 0 : index
      %21 = vector.load %arg8[%c0_15, %c0_16] : memref<1x128xf32, #tpu.memory_space<vmem>>, vector<1x128xf32>
      tpu.vector_store %arg8[%c0_15, %c0_16], %20 {strides = array<i32>} : memref<1x128xf32, #tpu.memory_space<vmem>>, vector<1x128xf32>,
    } else {
    }
    %c0 = arith.constant 0 : index
    %c0_1 = arith.constant 0 : index
    %c0_2 = arith.constant 0 : index
    %3 = vector.load %arg2[%c0, %c0_1, %c0_2] : memref<1x128x128xbf16, #tpu.memory_space<vmem>>, vector<1x128x128xbf16>
    %4 = vector.shape_cast %3 : vector<1x128x128xbf16> to vector<128x128xbf16>
    %c0_3 = arith.constant 0 : index
    %c0_4 = arith.constant 0 : index
    %5 = vector.load %arg3[%c0_3, %c0_4] : memref<128x128xbf16, #tpu.memory_space<vmem>>, vector<128x128xbf16>
    %cst = arith.constant dense<0.000000e+00> : vector<128x128xf32>
    %6 = tpu.matmul %4, %5, %cst {dimension_numbers = #tpu.dot_dimension_numbers<[1], [0], [0], [1], [0, 0, 1, 1], [], []>} : vector<128x128xbf16>, vector<128x128xbf16>, vector<128x128xf32> -> vector<128x128xf32>
    %c0_5 = arith.constant 0 : index
    %c0_6 = arith.constant 0 : index
    %7 = vector.load %arg4[%c0_5, %c0_6] : memref<1x128xf32, #tpu.memory_space<vmem>>, vector<1x128xf32>
    %8 = vector.broadcast %7 : vector<1x128xf32> to vector<128x128xf32>
    %9 = arith.addf %6, %8 : vector<128x128xf32>
    %cst_7 = arith.constant 0.000000e+00 : f32
    %10 = vector.broadcast %cst_7 : f32 to vector<128x128xf32>
    %11 = arith.maximumf %9, %10 : vector<128x128xf32>
    %c0_8 = arith.constant 0 : index
    %c0_9 = arith.constant 0 : index
    %12 = vector.load %arg8[%c0_8, %c0_9] : memref<1x128xf32, #tpu.memory_space<vmem>>, vector<1x128xf32>
    %13 = vector.shape_cast %11 : vector<128x128xf32> to vector<1x128x128xf32>
    %cst_10 = arith.constant dense<0.000000e+00> : vector<1x128xf32>
    %14 = vector.multi_reduction <add>, %13, %cst_10 [1] : vector<1x128x128xf32> to vector<1x128xf32>
    %15 = arith.addf %12, %14 : vector<1x128xf32>
    %c0_11 = arith.constant 0 : index
    %c0_12 = arith.constant 0 : index
    %16 = vector.load %arg8[%c0_11, %c0_12] : memref<1x128xf32, #tpu.memory_space<vmem>>, vector<1x128xf32>
    tpu.vector_store %arg8[%c0_11, %c0_12], %15 {strides = array<i32>} : memref<1x128xf32, #tpu.memory_space<vmem>>, vector<1x128xf32>,
    %c1_i32 = arith.constant 1 : i32
    %17 = arith.cmpi eq, %arg1, %c1_i32 : i32
    %18 = arith.extui %17 : i1 to i32
    %c0_i32_13 = arith.constant 0 : i32
    %19 = arith.cmpi ne, %18, %c0_i32_13 : i32
    scf.if %19 {
      %c0_14 = arith.constant 0 : index
      %c0_15 = arith.constant 0 : index
      %20 = vector.load %arg8[%c0_14, %c0_15] : memref<1x128xf32, #tpu.memory_space<vmem>>, vector<1x128xf32>
      %cst_16 = arith.constant 3.906250e-03 : f32
      %21 = vector.broadcast %cst_16 : f32 to vector<1x128xf32>
      %22 = arith.mulf %20, %21 : vector<1x128xf32>
      %c0_17 = arith.constant 0 : index
      %c0_18 = arith.constant 0 : index
      %23 = vector.load %arg5[%c0_17, %c0_18] : memref<128x128xf32, #tpu.memory_space<vmem>>, vector<128x128xf32>
      %cst_19 = arith.constant dense<0.000000e+00> : vector<1x128xf32>
      %24 = tpu.matmul %22, %23, %cst_19 {dimension_numbers = #tpu.dot_dimension_numbers<[1], [0], [0], [1], [0, 0, 1, 1], [], []>} : vector<1x128xf32>, vector<128x128xf32>, vector<1x128xf32> -> vector<1x128xf32>
      %c0_20 = arith.constant 0 : index
      %c0_21 = arith.constant 0 : index
      %25 = vector.load %arg6[%c0_20, %c0_21] : memref<1x128xf32, #tpu.memory_space<vmem>>, vector<1x128xf32>
      %26 = arith.addf %24, %25 : vector<1x128xf32>
      %27 = vector.shape_cast %26 : vector<1x128xf32> to vector<1x1x128xf32>
      %c0_22 = arith.constant 0 : index
      %c0_23 = arith.constant 0 : index
      %c0_24 = arith.constant 0 : index
      %28 = vector.load %arg7[%c0_22, %c0_23, %c0_24] : memref<1x1x128xf32, #tpu.memory_space<vmem>>, vector<1x1x128xf32>
      tpu.vector_store %arg7[%c0_22, %c0_23, %c0_24], %27 {strides = array<i32>} : memref<1x1x128xf32, #tpu.memory_space<vmem>>, vector<1x1x128xf32>,
    } else {
    }
    return
  }
  func.func @transform_0(%arg0: i32, %arg1: i32) -> (i32, i32, i32) {
    %c0_i32 = arith.constant 0 : i32
    %c0_i32_0 = arith.constant 0 : i32
    return %arg0, %arg1, %c0_i32 : i32, i32, i32
  }
  func.func @transform_1(%arg0: i32, %arg1: i32) -> (i32, i32) {
    %c0_i32 = arith.constant 0 : i32
    %c0_i32_0 = arith.constant 0 : i32
    %c0_i32_1 = arith.constant 0 : i32
    return %c0_i32, %c0_i32_0 : i32, i32
  }
  func.func @transform_2(%arg0: i32, %arg1: i32) -> (i32, i32) {
    %c0_i32 = arith.constant 0 : i32
    %c0_i32_0 = arith.constant 0 : i32
    %c0_i32_1 = arith.constant 0 : i32
    return %c0_i32, %c0_i32_0 : i32, i32
  }
  func.func @transform_3(%arg0: i32, %arg1: i32) -> (i32, i32) {
    %c0_i32 = arith.constant 0 : i32
    %c0_i32_0 = arith.constant 0 : i32
    %c0_i32_1 = arith.constant 0 : i32
    return %c0_i32, %c0_i32_0 : i32, i32
  }
  func.func @transform_4(%arg0: i32, %arg1: i32) -> (i32, i32) {
    %c0_i32 = arith.constant 0 : i32
    %c0_i32_0 = arith.constant 0 : i32
    %c0_i32_1 = arith.constant 0 : i32
    return %c0_i32, %c0_i32_0 : i32, i32
  }
  func.func @transform_5(%arg0: i32, %arg1: i32) -> (i32, i32, i32) {
    %c0_i32 = arith.constant 0 : i32
    %c0_i32_0 = arith.constant 0 : i32
    %c0_i32_1 = arith.constant 0 : i32
    return %arg0, %c0_i32, %c0_i32_0 : i32, i32, i32
  }
}

</mosaic_0001>

<bundles_post_ra>
// kernel: model_wrapper_forward.1
= control target key start
LH: loop header
LB: loop body
LE: loop exit
PB: predicated region body
PF: predicated region fallthrough
CT: control target
= control target key end

     0   :  { %10 = vsyncpa [#allocation4], 0  ;;  %s1324_s0 = inlined_call_operand.vmem [shape: bf16[2,256,128], index: 0, kind: input, shape index: {}]   ;;  %s1325_s1 = inlined_call_operand.vmem [shape: bf16[128,128], index: 1, kind: input, shape index: {}]   ;;  %s1326_s2 = inlined_call_operand.vmem [shape: f32[1,128], index: 2, kind: input, shape index: {}]   ;;  %s1327_s3 = inlined_call_operand.vmem [shape: f32[128,128], index: 3, kind: input, shape index: {}]   ;;  %s1328_s4 = inlined_call_operand.vmem [shape: f32[1,128], index: 4, kind: input, shape index: {}]   ;;  %s1329_s5 = inlined_call_operand.hbm [shape: f32[2,1,128], index: 5, kind: output, shape index: {}]  }
   0x1   :  { %12 = vsyncpa [#allocation4 + $0x1], 0  ;;  %s1099_s18 = smov 0   ;;  %s1101_s19 = smov 0  }
   0x2   :  { %s1103_s20 = smov 0   ;;  %s1105_s21 = smov 0  }
   0x3   :  { %s1107_s22 = smov 0   ;;  %s1109_s23 = smov 0  }
   0x4   :  { %s1111_s24 = smov 0   ;;  %s1113_s25 = smov 0  }
   0x5 LB: > { %s707_s26 = sadd.s32 4294967295, %s1062_s25   ;;  %s708_s27 = sadd.s32 4294967294, %s1062_s25   ;;  %s1062_s25 = sphi %s1113_s25, %s18_s25   ;;  %s1058_s24 = sphi %s1111_s24, %s1338_s24   ;;  %s1054_s23 = sphi %s1109_s23, %s1337_s23   ;;  %s1050_s22 = sphi %s1107_s22, %s1336_s22   ;;  %s1046_s21 = sphi %s1105_s21, %s1335_s21   ;;  %s1042_s20 = sphi %s1103_s20, %s1334_s20   ;;  %s1038_s19 = sphi %s1101_s19, %s1333_s19   ;;  %s1034_s18 = sphi %s1099_s18, %s1332_s18  }
   0x6   : > { %s27_s28 = sadd.s32 1, %s1054_s23  ;;  %s30_s29 = sadd.s32 1, %s1058_s24 }
   0x7   : > { %p28_p0 = scmp.ge.s32.totalorder %s27_s28, 2  ;;  %p159_p1 = scmp.ne.s32.totalorder %s1042_s20, %s1038_s19 }
   0x8   : > { %p160_p2 = scmp.eq.s32.totalorder %s707_s26, 3  ;;  %p165_p4 = scmp.ne.s32.totalorder %s1038_s19, %s1034_s18 }
   0x9   : > { %s1340_s28 = smov (%p28_p0, %s27_s28), 0  ;;  %s1342_s29 = smov (!%p28_p0, %s30_s29), %s1058_s24 }
   0xa   : > { %p1148_p3 = por %p160_p2, %p159_p1  ;;  %p32_p5 = scmp.ge.s32.totalorder %s1342_s29, 2 }
   0xb   : > { %p166_p6 = scmp.eq.s32.totalorder %s708_s27, 3  ;;  %p711_p7 = scmp.ge.s32.totalorder %s1062_s25, 1 }
   0xc   : > { %p209_p8 = scmp.lt.s32.totalorder %s1062_s25, 5  ;;  %s1344_s29 = smov (%p32_p5, %s1342_s29), 0 }
   0xd   : > { %p1158_p9 = por %p166_p6, %p165_p4  ;;  %s146_s7 = ssub.s32 %s1058_s24, %s1344_s29 }
   0xe   : > { %p210_p10 = pnand %p711_p7, %p209_p8  ;;  %s149_s8 = sadd.s32 1, %s1042_s20 }
   0xf   : > { %p147_p11 = scmp.eq.s32.totalorder %s146_s7, 0  ;;  %s238_s10 = sand.u32 (!%p210_p10), 1, %s1038_s19  }
  0x10   : > { %213 = sbr.rel (%p210_p10) target bundleno = 576 (0x240), region = 40  ;;  %s712_s11 = sshll.u32 (!%p210_p10), %s1046_s21, 4 }
  0x11   : > { %s1166_s9 = scalar_select %p147_p11, %s1042_s20, %s149_s8  }
  0x12   : > { %p241_p12 = scmp.lt.s32.totalorder (!%p210_p10), %s1050_s22, 1  ;;  %p243_p13 = scmp.lt.s32.totalorder (!%p210_p10), %s712_s11, 31 }
  0x13   : > { %s1179_s27 = scalar_lea.vmem (!%p210_p10), [#allocation3], %s238_s10  ;;  %p715_p0 = scmp.ne.s32.totalorder (!%p210_p10), %s1046_s21, 0 }
  0x17   : > { %s242_s12 = scalar_select %p241_p12, %s1050_s22, 1 }
  0x18   : > { %s1346_s11 = smov (!%p243_p13, %s712_s11), 31  ;;  %254 = sbr.rel (%p715_p0) target bundleno = 31 (0x1f), region = 44 }
  0x19   : > { %s713_s13 = sshll.u32 %s242_s12, 5  ;;  %v1064_v0 = vmov (!%p715_p0), 0.0  }
  0x1a   : > { %s246_s14 = sadd.s32 %s713_s13, %s1346_s11  ;;  %255 = vst [vmem:[#allocation2] sm:$0x1] (!%p715_p0), %v1064_v0 }
  0x1b   : > { %s714_s15 = sshll.u32 %s246_s14, 2 }
  0x1c   : > { %s1175_s26 = scalar_lea.vmem %s1324_s0, %s714_s15 }
  0x1f PF: > { %v952_v1 = vld [vmem:[%s1325_s1] sm:$0xff]   ;;  %v953_v2 = vld [vmem:[%s1325_s1 + $0x8] sm:$0xff]   ;;  %v954_v3 = vld [vmem:[%s1325_s1 + $0x10] sm:$0xff]   ;;  %p733_p1 = scmp.ne.s32.totalorder %s1046_s21, 1 }
  0x20   : > { %770 = vmatprep.subr.bf16.mxu0 %v952_v1  ;;  %861 = vmatprep.subr.bf16.mxu1 %v952_v1  ;;  %v955_v4 = vld [vmem:[%s1325_s1 + $0x18] sm:$0xff]   ;;  %v960_v5 = vld [vmem:[%s1175_s26] sm:$0xff]   ;;  %v957_v8 = vld [vmem:[%s1325_s1 + $0x28] sm:$0xff]   ;;  %vm1066_vm0 = vmmov (!%p733_p1), 0  }
  0x21   : > { %771 = vmatpush3.bf16.msra.mxu0 %v952_v1  ;;  %869 = vmatpush3.bf16.msra.mxu1 %v952_v1  ;;  %v956_v6 = vld [vmem:[%s1325_s1 + $0x20] sm:$0xff]   ;;  %v958_v9 = vld [vmem:[%s1325_s1 + $0x30] sm:$0xff]   ;;  %v959_v10 = vld [vmem:[%s1325_s1 + $0x38] sm:$0xff]  }
  0x22   : > { %772 = vmatprep.subr.bf16.mxu0 %v953_v2  ;;  %862 = vmatprep.subr.bf16.mxu1 %v953_v2  ;;  %v964_v7 = vld [vmem:[%s1175_s26 + $0x20] sm:$0xff]   ;;  %v961_v11 = vld [vmem:[%s1175_s26 + $0x8] sm:$0xff]   ;;  %v962_v13 = vld [vmem:[%s1175_s26 + $0x10] sm:$0xff]  }
  0x23   : > { %786 = vmatprep.mubr.bf16.mxu0 %v960_v5  ;;  %794 = vmatprep.mubr.bf16.mxu1 %v964_v7  ;;  %v965_v12 = vld [vmem:[%s1175_s26 + $0x28] sm:$0xff]   ;;  %v966_v14 = vld [vmem:[%s1175_s26 + $0x30] sm:$0xff]   ;;  %v963_v15 = vld [vmem:[%s1175_s26 + $0x18] sm:$0xff]  }
  0x24   : > { %v967_v16 = vld [vmem:[%s1175_s26 + $0x38] sm:$0xff]   ;;  %v716_v17 = vld [vmem:[%s1326_s2] ss:$0 sm:$0xff] }
  0x25   : > { %773 = vmatpush3.bf16.msra.mxu0 %v953_v2  ;;  %870 = vmatpush3.bf16.msra.mxu1 %v953_v2 }
  0x26   : > { %774 = vmatprep.subr.bf16.mxu0 %v954_v3  ;;  %863 = vmatprep.subr.bf16.mxu1 %v954_v3 }
  0x29   : > { %775 = vmatpush3.bf16.msra.mxu0 %v954_v3  ;;  %871 = vmatpush3.bf16.msra.mxu1 %v954_v3 }
  0x2a   : > { %776 = vmatprep.subr.bf16.mxu0 %v955_v4  ;;  %864 = vmatprep.subr.bf16.mxu1 %v955_v4 }
  0x2d   : > { %777 = vmatpush3.bf16.msra.mxu0 %v955_v4  ;;  %872 = vmatpush3.bf16.msra.mxu1 %v955_v4 }
  0x2e   : > { %778 = vmatprep.subr.bf16.mxu0 %v956_v6  ;;  %865 = vmatprep.subr.bf16.mxu1 %v956_v6 }
  0x31   : > { %779 = vmatpush3.bf16.msra.mxu0 %v956_v6  ;;  %873 = vmatpush3.bf16.msra.mxu1 %v956_v6 }
  0x32   : > { %780 = vmatprep.subr.bf16.mxu0 %v957_v8  ;;  %866 = vmatprep.subr.bf16.mxu1 %v957_v8 }
  0x35   : > { %781 = vmatpush3.bf16.msra.mxu0 %v957_v8  ;;  %874 = vmatpush3.bf16.msra.mxu1 %v957_v8 }
  0x36   : > { %782 = vmatprep.subr.bf16.mxu0 %v958_v9  ;;  %867 = vmatprep.subr.bf16.mxu1 %v958_v9 }
  0x39   : > { %783 = vmatpush3.bf16.msra.mxu0 %v958_v9  ;;  %875 = vmatpush3.bf16.msra.mxu1 %v958_v9 }
  0x3a   : > { %784 = vmatprep.subr.bf16.mxu0 %v959_v10  ;;  %868 = vmatprep.subr.bf16.mxu1 %v959_v10 }
  0x3d   : > { %785 = vmatpush3.bf16.msra.mxu0 %v959_v10  ;;  %876 = vmatpush3.bf16.msra.mxu1 %v959_v10 }
  0x40   : > { %787 = vmatmul.mubr.bf16.vlgmr.msra.gmra.mrb[0].mxu0 %v961_v11  ;;  %795 = vmatmul.mubr.bf16.vlgmr.msra.gmra.mrb[0].mxu1 %v965_v12 }
  0x41   : > { %790 = vmatprep.mubr.bf16.mxu0 %v962_v13  ;;  %798 = vmatprep.mubr.bf16.mxu1 %v966_v14 }
  0x48   : > { %791 = vmatmul.mubr.bf16.gmra.mrb[4].mxu0 %v963_v15  ;;  %799 = vmatmul.mubr.bf16.gmra.mrb[4].mxu1 %v967_v16 }
 0x113   : > { %v788_v18 = vpop.f32.mrb[0].mxu0  ;;  %v796_v19 = vpop.f32.mrb[0].mxu1 }
 0x114   : > { %v425_v20 = vpop.f32.mrb[1].mxu0  ;;  %v457_v21 = vpop.f32.mrb[1].mxu1  ;;  %v434_v27 = vadd.f32 %v788_v18, %v716_v17  ;;  %v466_v59 = vadd.f32 %v796_v19, %v716_v17 }
 0x115   : > { %v426_v22 = vadd.f32 %v716_v17, %v425_v20  ;;  %v789_v23 = vpop.f32.mrb[2].mxu0  ;;  %v797_v24 = vpop.f32.mrb[2].mxu1  ;;  %v458_v52 = vadd.f32 %v716_v17, %v457_v21 }
 0x116   : > { %v428_v25 = vpop.f32.mrb[3].mxu0  ;;  %v460_v26 = vpop.f32.mrb[3].mxu1  ;;  %v437_v30 = vadd.f32 %v789_v23, %v716_v17  ;;  %v490_v32 = vmax.f32 %v434_v27, 0.0  ;;  %v469_v62 = vadd.f32 %v797_v24, %v716_v17  ;;  %v498_v1 = vmax.f32 %v466_v59, 0.0  ;;  %v504_v23 = vld [vmem:[#allocation2] sm:$0x1] }
 0x117   : > { %v429_v28 = vadd.f32 %v716_v17, %v428_v25  ;;  %v488_v29 = vmax.f32 %v426_v22, 0.0  ;;  %v496_v57 = vmax.f32 %v458_v52, 0.0  ;;  %v461_v58 = vadd.f32 %v716_v17, %v460_v26  ;;  %v535_v26 = vld [vmem:[%s1327_s3 + $0x8] sm:$0xff] (!%p733_p1)  ;;  %v536_v27 = vld [vmem:[%s1327_s3 + $0x10] sm:$0xff] (!%p733_p1) }
 0x118   : > { %v491_v38 = vmax.f32 %v437_v30, 0.0  ;;  %v499_v3 = vmax.f32 %v469_v62, 0.0  ;;  %v537_v30 = vld [vmem:[%s1327_s3 + $0x18] sm:$0xff] (!%p733_p1) }
 0x119   : > { %v489_v31 = vmax.f32 %v429_v28, 0.0  ;;  %v497_v63 = vmax.f32 %v461_v58, 0.0  ;;  %v1065_v28 = vmov (!%p733_p1), 0.0|0.0  }
 0x11a   : > { %837 = vmatprep.subr.bf16.mxu0 (!%p733_p1), %v1065_v28 }
 0x11b   : > { %v505_v33 = vadd.f32 %v489_v31, %v488_v29  ;;  %v792_v34 = vpop.f32.mrb[4].mxu0  ;;  %v800_v35 = vpop.f32.mrb[4].mxu1  ;;  %v1067_v31 = vmov (!%p733_p1), 0.0  }
 0x11c   : > { %v441_v36 = vpop.f32.mrb[5].mxu0  ;;  %v473_v37 = vpop.f32.mrb[5].mxu1  ;;  %v450_v45 = vadd.f32 %v792_v34, %v716_v17  ;;  %v482_v7 = vadd.f32 %v800_v35, %v716_v17  ;;  %834 = vmatprep.mubr.msk.f32.mxu0 (!%p733_p1), %vm1066_vm0, %v1067_v31  ;;  %v539_v34 = vld [vmem:[%s1327_s3 + $0x28] sm:$0xff] (!%p733_p1) }
 0x11d   : > { %v506_v39 = vadd.f32 %v505_v33, %v490_v32  ;;  %v442_v40 = vadd.f32 %v716_v17, %v441_v36  ;;  %v793_v41 = vpop.f32.mrb[6].mxu0  ;;  %v801_v42 = vpop.f32.mrb[6].mxu1  ;;  %v474_v0 = vadd.f32 %v716_v17, %v473_v37  ;;  %v841_v32 = vpack.c.bf16 (!%p733_p1), %v537_v30, %v536_v27  ;;  %v538_v33 = vld [vmem:[%s1327_s3 + $0x20] sm:$0xff] (!%p733_p1)  ;;  %v540_v36 = vld [vmem:[%s1327_s3 + $0x30] sm:$0xff] (!%p733_p1)  ;;  %v541_v37 = vld [vmem:[%s1327_s3 + $0x38] sm:$0xff] (!%p733_p1) }
 0x11e   : > { %v444_v43 = vpop.f32.mrb[7].mxu0  ;;  %v476_v44 = vpop.f32.mrb[7].mxu1  ;;  %v453_v50 = vadd.f32 %v793_v41, %v716_v17  ;;  %v494_v53 = vmax.f32 %v450_v45, 0.0  ;;  %v485_v10 = vadd.f32 %v801_v42, %v716_v17  ;;  %v502_v12 = vmax.f32 %v482_v7, 0.0  ;;  %v544_v42 = vld [vmem:[%s1327_s3 + $0x50] sm:$0xff] (!%p733_p1)  ;;  %v546_v45 = vld [vmem:[%s1327_s3 + $0x60] sm:$0xff] (!%p733_p1) }
 0x11f   : > { %v492_v46 = vmax.f32 %v442_v40, 0.0  ;;  %v507_v47 = vadd.f32 %v506_v39, %v491_v38  ;;  %v445_v48 = vadd.f32 %v716_v17, %v444_v43  ;;  %v500_v5 = vmax.f32 %v474_v0, 0.0  ;;  %v542_v39 = vld [vmem:[%s1327_s3 + $0x40] sm:$0xff] (!%p733_p1)  ;;  %v543_v40 = vld [vmem:[%s1327_s3 + $0x48] sm:$0xff] (!%p733_p1)  ;;  %v545_v43 = vld [vmem:[%s1327_s3 + $0x58] sm:$0xff] (!%p733_p1) }
 0x120   : > { %v495_v55 = vmax.f32 %v453_v50, 0.0  ;;  %v477_v6 = vadd.f32 %v716_v17, %v476_v44  ;;  %v503_v14 = vmax.f32 %v485_v10, 0.0  ;;  %v534_v17 = vld [vmem:[%s1327_s3] sm:$0xff] (!%p733_p1)  ;;  %v844_v35 = vpack.c.bf16 (!%p733_p1), %v539_v34, %v538_v33 }
 0x121   : > { %v508_v49 = vadd.f32 %v507_v47, %v492_v46  ;;  %v493_v51 = vmax.f32 %v445_v48, 0.0  ;;  %v838_v29 = vpack.c.bf16 (!%p733_p1), %v535_v26, %v534_v17  ;;  %v847_v38 = vpack.c.bf16 (!%p733_p1), %v541_v37, %v540_v36  ;;  %v547_v46 = vld [vmem:[%s1327_s3 + $0x68] sm:$0xff] (!%p733_p1)  ;;  %v548_v48 = vld [vmem:[%s1327_s3 + $0x70] sm:$0xff] (!%p733_p1) }
 0x122   : > { %v501_v11 = vmax.f32 %v477_v6, 0.0  ;;  %v850_v41 = vpack.c.bf16 (!%p733_p1), %v543_v40, %v542_v39  ;;  %v853_v44 = vpack.c.bf16 (!%p733_p1), %v545_v43, %v544_v42  ;;  %v856_v47 = vpack.c.bf16 (!%p733_p1), %v547_v46, %v546_v45 }
 0x123   : > { %v509_v54 = vadd.f32 %v508_v49, %v493_v51  ;;  %839 = vmatpush3.bf16.msra.mxu0 (!%p733_p1), %v838_v29  ;;  %v549_v49 = vld [vmem:[%s1327_s3 + $0x78] sm:$0xff] (!%p733_p1) }
 0x124   : > { %840 = vmatprep.subr.bf16.mxu0 (!%p733_p1), %v1065_v28  ;;  %v859_v50 = vpack.c.bf16 (!%p733_p1), %v549_v49, %v548_v48 }
 0x125   : > { %v510_v56 = vadd.f32 %v509_v54, %v494_v53  ;;  %v550_v53 = vld [vmem:[%s1328_s4] sm:$0x1] (!%p733_p1) }
 0x127   : > { %v511_v60 = vadd.f32 %v510_v56, %v495_v55  ;;  %842 = vmatpush3.bf16.msra.mxu0 (!%p733_p1), %v841_v32 }
 0x128   : > { %843 = vmatprep.subr.bf16.mxu0 (!%p733_p1), %v1065_v28 }
 0x129   : > { %v512_v61 = vadd.f32 %v511_v60, %v496_v57 }
 0x12b   : > { %v513_v2 = vadd.f32 %v512_v61, %v497_v63  ;;  %845 = vmatpush3.bf16.msra.mxu0 (!%p733_p1), %v844_v35 }
 0x12c   : > { %846 = vmatprep.subr.bf16.mxu0 (!%p733_p1), %v1065_v28 }
 0x12d   : > { %v514_v4 = vadd.f32 %v513_v2, %v498_v1 }
 0x12f   : > { %v515_v8 = vadd.f32 %v514_v4, %v499_v3  ;;  %848 = vmatpush3.bf16.msra.mxu0 (!%p733_p1), %v847_v38 }
 0x130   : > { %849 = vmatprep.subr.bf16.mxu0 (!%p733_p1), %v1065_v28 }
 0x131   : > { %v516_v9 = vadd.f32 %v515_v8, %v500_v5 }
 0x133   : > { %v517_v13 = vadd.f32 %v516_v9, %v501_v11  ;;  %851 = vmatpush3.bf16.msra.mxu0 (!%p733_p1), %v850_v41 }
 0x134   : > { %852 = vmatprep.subr.bf16.mxu0 (!%p733_p1), %v1065_v28 }
 0x135   : > { %v518_v15 = vadd.f32 %v517_v13, %v502_v12 }
 0x137   : > { %v519_v16 = vadd.f32 %v518_v15, %v503_v14  ;;  %854 = vmatpush3.bf16.msra.mxu0 (!%p733_p1), %v853_v44 }
 0x138   : > { %855 = vmatprep.subr.bf16.mxu0 (!%p733_p1), %v1065_v28 }
 0x139   : > { %v520_v18 = vrot.slane %v519_v16, 4 }
 0x13b   : > { %v521_v19 = vadd.f32 %v520_v18, %v519_v16  ;;  %857 = vmatpush3.bf16.msra.mxu0 (!%p733_p1), %v856_v47 }
 0x13c   : > { %858 = vmatprep.subr.bf16.mxu0 (!%p733_p1), %v1065_v28 }
 0x13d   : > { %v522_v20 = vrot.slane %v521_v19, 2 }
 0x13f   : > { %v523_v21 = vadd.f32 %v522_v20, %v521_v19  ;;  %860 = vmatpush3.bf16.msra.mxu0 (!%p733_p1), %v859_v50 }
 0x141   : > { %v524_v22 = vrot.slane %v523_v21, 1  ;;  %531 = sbr.rel (%p733_p1) target bundleno = 552 (0x228), region = 48 }
 0x143   : > { %v525_v24 = vadd.f32 %v524_v22, %v523_v21 }
 0x145   : > { %v526_v25 = vadd.f32 %v525_v24, %v504_v23 }
 0x147   : > { %527 = vst [vmem:[#allocation2] sm:$0x1] %v526_v25 }
 0x14e   : > { %v532_v51 = vld [vmem:[#allocation2] sm:$0x1] }
 0x14f   : > { %v533_v52 = vmul.f32 0.00390625, %v532_v51 }
 0x151   : > { %835 = vmatmul.mubr.f32.vlgmr.msra.gmra.mrb[0].mxu0 %v533_v52 }
 0x224   : > { %v617_v54 = vpop.f32.mrb[0].mxu0 }
 0x225   : > { %v618_v55 = vadd.f32 %v617_v54, %v550_v53  ;;  %v836_v56 = vpop.f32.mrb[1].mxu0 }
 0x227   : > { %621 = vst [vmem:[%s1179_s27] sm:$0x1] %v618_v55 }
 0x228 PF: > { %s734_s7 = sshll.u32 %s1050_s22, 4  ;;  %s635_s13 = sshll.u32 %s1179_s27, 4  ;;  %s636_s13 = int_to_ptr.vmem [resolvable:$true] %s635_s13 }
 0x229   : > { %s1274_s12 = scalar_lea.hbm %s1329_s5, %s734_s7  ;;  %s623_s14 = scalar_lea.sflag [#allocation4], %s238_s10 }
 0x22a   : > { %s968_s15 = scalar_lea.vmem %s636_s13, 16  ;;  %s1068_s21 = smov [#allocation3]  }
 0x22b   : > { %p969_p2 = scmp.ne.s32.totalorder %s636_s13, %s968_s15  ;;  %s972_s16 = sshll.u32 %s1068_s21, 4  ;;  %s973_s16 = int_to_ptr.vmem [resolvable:$false] %s972_s16 }
 0x22c   : > { %s974_s17 = scalar_lea.vmem %s973_s16, 32  ;;  %p975_p6 = scmp.lt.s32.totalorder %s636_s13, %s973_s16 }
 0x22d   : > { %p970_p4 = pnand %p969_p2, %p1148_p3  ;;  %p976_p7 = scmp.lt.s32.totalorder %s974_s17, %s968_s15 }
 0x22f   : > { %p971_p5 = pneg %p970_p4  ;;  %p977_p8 = por %p976_p7, %p975_p6 }
 0x231   : > { %p978_p10 = pnand %p977_p8, %p971_p5 }
 0x233   : > { %981 = shalt.err (!%p978_p10)
}
 0x234   : > { %s982_s22 = scalar_lea.hbm %s1274_s12, 16  ;;  %s986_s26 = scalar_lea.hbm %s1329_s5, 32 }
 0x235   : > { %p983_p11 = scmp.ne.s32.totalorder %s1274_s12, %s982_s22  ;;  %p987_p0 = scmp.lt.u32.totalorder %s1274_s12, %s1329_s5 }
 0x236   : > { %p988_p1 = scmp.lt.u32.totalorder %s986_s26, %s982_s22  ;;  %p990_p4 = scmp.lt.u32.totalorder %s982_s22, %s1274_s12 }
 0x237   : > { %p984_p12 = pnand %p983_p11, %p1148_p3 }
 0x238   : > { %p989_p2 = por %p988_p1, %p987_p0 }
 0x239   : > { %p985_p13 = pneg %p984_p12 }
 0x23a   : > { %p991_p5 = por %p990_p4, %p989_p2 }
 0x23c   : > { %p992_p6 = pnand %p991_p5, %p985_p13 }
 0x23e   : > { %995 = shalt.err (!%p992_p6)
}
 0x23f   : > { %877 = dma.vmem_to_hbm [thread:$0]  (%p1148_p3), %s636_s13, 16, %s1274_s12, %s623_s14  }
 0x240 PF: > { %p883_p7 = scmp.ge.s32.totalorder %s1062_s25, 2  ;;  %s647_s11 = sand.u32 1, %s1034_s18  }
 0x241   : > { %s648_s15 = scalar_lea.sflag [#allocation4], %s647_s11 }
 0x242   : > { %p880_p8 = pnand %p883_p7, %p1158_p9 }
 0x244   : > { %1029 = dma.done.wait (!%p880_p8), %s648_s15, 16  }
 0x245   : > { %1031 = vsyncadd (!%p880_p8), %s648_s15, 4294967280  ;;  %s18_s25 = sadd.s32 1, %s1062_s25   ;;  %s1332_s18 = smov %s1038_s19 }
 0x246   : > { %p15_p10 = scmp.ge.s32.totalorder %s18_s25, 6   ;;  %s1333_s19 = smov %s1042_s20 }
 0x247   : > { %s1334_s20 = smov %s1166_s9  ;;  %s1335_s21 = smov %s1054_s23 }
 0x248   : > { %s1336_s22 = smov %s1058_s24  ;;  %s1337_s23 = smov %s1340_s28 }
 0x249   : > { %s1338_s24 = smov %s1344_s29  ;;  %17 = sbr.rel (!%p15_p10) target bundleno = 5 (0x5), region = 83 }
 0x250   :  { %652 = vsyncpa [#allocation4], 1 }
 0x251   :  { %654 = vsyncpa [#allocation4 + $0x1], 1 }

</bundles_post_ra>
